<compile_context>
chip_gen: v7x
topology: tpu7x:2x2x1
jax: 0.10.0
libtpu: 0.0.40
codegen_flags: <defaults>
</compile_context>

<pallas_src>
import functools

import jax
import jax.numpy as jnp
from jax.experimental import pallas as pl
from jax.experimental.pallas import tpu as pltpu


def _ceil_to(x, m):
    return ((x + m - 1) // m) * m


def _reghead_kernel(x_ref, w1_ref, t1_ref, w2_ref, b2_ref, o_ref,
                    xpad_ref, xcol_ref, *, H, W, Cout):
    # x_ref   : (1, Cin, H*W)      one image, flat spatial, unpadded
    # w1_ref  : (Cmid_p, 9*Cin)    3x3 conv weights, BN scale folded, K order (ky,kx,cin)
    # t1_ref  : (Cmid_p, 1)        folded BN shift (acts as conv1 bias)
    # w2_ref  : (Cout_p, Cmid_p)   1x1 conv weights (zero padded to sublane tile)
    # b2_ref  : (Cout_p, 1)        1x1 conv bias   (zero padded)
    # o_ref   : (1, Cout, H*W)     lane-dense output slab
    # xpad_ref: (Cin, (H+4)*W)     VMEM scratch: image with 2 zero halo rows top + bottom
    # xcol_ref: (9*Cin, H*W)       VMEM scratch: im2col tile
    Cin = x_ref.shape[1]
    HW = H * W

    # Re-zero halo rows every step (scratch persists across steps, and the parallel batch
    # axis may be split across TensorCores, so "only on program_id==0" init is not safe).
    xpad_ref[:, 0:2 * W] = jnp.zeros((Cin, 2 * W), jnp.float32)
    xpad_ref[:, (H + 2) * W:(H + 4) * W] = jnp.zeros((Cin, 2 * W), jnp.float32)
    # Copy the unpadded image into the interior (replaces the wrapper-side HBM pad pass).
    xpad_ref[:, 2 * W:(H + 2) * W] = x_ref[0].astype(jnp.float32)

    # Column masks for the horizontal taps (built once at full shape so jnp.where does not
    # re-broadcast inside the tap loop).
    col = jax.lax.broadcasted_iota(jnp.int32, (Cin, HW), 1) % W
    not_left = col != 0           # kx == 0 taps would read col W-1 of the previous row
    not_right = col != (W - 1)    # kx == 2 taps would read col 0 of the next row

    # Build the (9*Cin, HW) im2col tile straight into VMEM scratch: for flat output index
    # o, tap (ky,kx) needs padded flat input index o + (ky+1)*W + kx - 1.
    for ky in range(3):
        for kx in range(3):
            t = ky * 3 + kx
            s = (ky + 1) * W + (kx - 1)          # static offset, >= W-1 >= 0
            v = xpad_ref[:, s:s + HW]            # static lane-offset slice
            if kx == 0:
                v = jnp.where(not_left, v, 0.0)
            elif kx == 2:
                v = jnp.where(not_right, v, 0.0)
            xcol_ref[t * Cin:(t + 1) * Cin, :] = v   # aligned row-block store

    # conv1 (3x3, pad=1) with BN scale folded into the weights: single K=9*Cin matmul.
    y = jax.lax.dot_general(
        w1_ref[...], xcol_ref[...],
        (((1,), (0,)), ((), ())), preferred_element_type=jnp.float32)
    y = jnp.maximum(y + t1_ref[...], 0.0)            # folded BN shift + ReLU

    # conv2 (1x1) + bias + sigmoid on full (8,128) sublane tiles.
    z = jax.lax.dot_general(
        w2_ref[...], y,
        (((1,), (0,)), ((), ())), preferred_element_type=jnp.float32) + b2_ref[...]
    z = jax.nn.sigmoid(z)                             # (Cout_p, HW)

    o_ref[0] = z[:Cout, :].astype(o_ref.dtype)        # lane-dense, 128-aligned store


@jax.jit
def reghead_forward(x_nchw, params):
    """x_nchw: (N, Cin, H, W) float32. Returns (N, Cout, H, W)."""
    w1, b1, gamma, beta, run_mean, run_var, w2, b2 = (
        params["w1"], params["b1"], params["gamma"], params["beta"],
        params["run_mean"], params["run_var"], params["w2"], params["b2"])
    eps = 1e-5

    N, Cin, H, W = x_nchw.shape
    Cmid = w1.shape[0]            # Cin // 2
    Cout = w2.shape[0]
    HW = H * W
    SUB = 8
    Cmid_p = _ceil_to(Cmid, SUB)
    Cout_p = _ceil_to(Cout, SUB)

    # Fold eval-mode BatchNorm into conv1: scale into the weights, shift as a bias.
    bn_scale = gamma / jnp.sqrt(run_var + eps)                     # (Cmid,)
    bn_shift = beta + bn_scale * (b1 - run_mean)                   # (Cmid,)
    w1f = w1 * bn_scale[:, None, None, None]                       # (Cmid, Cin, 3, 3)
    # (Cmid, Cin, ky, kx) -> (Cmid, ky, kx, Cin) -> (Cmid, 9*Cin); matches xcol row order.
    w1_mat = jnp.transpose(w1f, (0, 2, 3, 1)).reshape(Cmid, 9 * Cin)

    # Zero-pad channel dims to full sublane tiles.  Padded Cmid rows are exactly zero
    # after ReLU(0 + 0) and padded w2 rows/cols are zero, so the padding never leaks; the
    # padded z rows are never stored.
    w1_p = jnp.zeros((Cmid_p, 9 * Cin), jnp.float32).at[:Cmid].set(w1_mat)
    t1_p = jnp.zeros((Cmid_p, 1), jnp.float32).at[:Cmid, 0].set(bn_shift)
    w2_p = jnp.zeros((Cout_p, Cmid_p), jnp.float32).at[:Cout, :Cmid].set(w2[:, :, 0, 0])
    b2_p = jnp.zeros((Cout_p, 1), jnp.float32).at[:Cout, 0].set(b2)

    # Stay NCHW; the only wrapper glue is a free contiguous reshape (no pad, no transpose).
    x_work = x_nchw.reshape(N, Cin, HW)

    kernel = functools.partial(_reghead_kernel, H=H, W=W, Cout=Cout)

    # Explicit VMEM budget: double-buffered blocks + scratch, generous headroom, capped to
    # stay well inside v7x's 64 MiB physical VMEM (v5e's default scoped limit is 16 MiB).
    block_bytes = 4 * (Cin * HW + Cmid_p * 9 * Cin + Cmid_p
                       + Cout_p * Cmid_p + Cout_p + Cout * HW)
    scratch_bytes = 4 * (Cin * (H + 4) * W + 9 * Cin * HW)
    vmem_limit = min(_ceil_to(4 * block_bytes + 2 * scratch_bytes, 1 << 20) + (1 << 20),
                     48 << 20)

    out = pl.pallas_call(
        kernel,
        out_shape=jax.ShapeDtypeStruct((N, Cout, HW), x_nchw.dtype),
        grid_spec=pltpu.PrefetchScalarGridSpec(
            num_scalar_prefetch=0,
            grid=(N,),   # one image per step -> >=2 parallel steps for N>=2 (v7x megacore)
            in_specs=[
                pl.BlockSpec((1, Cin, HW), lambda b: (b, 0, 0)),
                pl.BlockSpec((Cmid_p, 9 * Cin), lambda b: (0, 0)),   # grid-invariant
                pl.BlockSpec((Cmid_p, 1), lambda b: (0, 0)),
                pl.BlockSpec((Cout_p, Cmid_p), lambda b: (0, 0)),
                pl.BlockSpec((Cout_p, 1), lambda b: (0, 0)),
            ],
            out_specs=pl.BlockSpec((1, Cout, HW), lambda b: (b, 0, 0)),
            scratch_shapes=[
                pltpu.VMEM((Cin, (H + 4) * W), jnp.float32),   # halo-padded image
                pltpu.VMEM((9 * Cin, HW), jnp.float32),        # im2col tile
            ],
        ),
        compiler_params=pltpu.CompilerParams(
            dimension_semantics=("parallel",),
            vmem_limit_bytes=vmem_limit),
    )(x_work, w1_p, t1_p, w2_p, b2_p)

    return out.reshape(N, Cout, H, W)   # free contiguous reshape, no transpose


def _reference_forward(x_nchw, params):
    """Pure-JAX reference (eval-mode BatchNorm) for correctness checking."""
    w1, b1, gamma, beta, rm, rv, w2, b2 = (
        params["w1"], params["b1"], params["gamma"], params["beta"],
        params["run_mean"], params["run_var"], params["w2"], params["b2"])
    eps = 1e-5
    y = jax.lax.conv_general_dilated(
        x_nchw, w1, window_strides=(1, 1), padding=((1, 1), (1, 1)),
        dimension_numbers=("NCHW", "OIHW", "NCHW"))
    y = y + b1[None, :, None, None]
    y = (y - rm[None, :, None, None]) / jnp.sqrt(rv[None, :, None, None] + eps)
    y = y * gamma[None, :, None, None] + beta[None, :, None, None]
    y = jnp.maximum(y, 0.0)
    z = jax.lax.conv_general_dilated(
        y, w2, window_strides=(1, 1), padding=((0, 0), (0, 0)),
        dimension_numbers=("NCHW", "OIHW", "NCHW"))
    z = z + b2[None, :, None, None]
    return jax.nn.sigmoid(z)


def make_params(key, input_channel, output_channel):
    Cmid = input_channel // 2
    ks = jax.random.split(key, 8)
    params = {
        "w1": 0.1 * jax.random.normal(ks[0], (Cmid, input_channel, 3, 3), jnp.float32),
        "b1": 0.1 * jax.random.normal(ks[1], (Cmid,), jnp.float32),
        "gamma": 1.0 + 0.1 * jax.random.normal(ks[2], (Cmid,), jnp.float32),
        "beta": 0.1 * jax.random.normal(ks[3], (Cmid,), jnp.float32),
        "run_mean": 0.1 * jax.random.normal(ks[4], (Cmid,), jnp.float32),
        "run_var": jnp.abs(1.0 + 0.1 * jax.random.normal(ks[5], (Cmid,), jnp.float32)),
        "w2": 0.1 * jax.random.normal(ks[6], (output_channel, Cmid, 1, 1), jnp.float32),
        "b2": 0.1 * jax.random.normal(ks[7], (output_channel,), jnp.float32),
    }
    return params


if __name__ == "__main__":
    key = jax.random.PRNGKey(0)
    k_x, k_p = jax.random.split(key)

    N, Cin, H, W = 2, 8, 16, 16
    Cout = 4

    x = jax.random.normal(k_x, (N, Cin, H, W), jnp.float32)
    params = make_params(k_p, Cin, Cout)

    out = reghead_forward(x, params)
    out = jax.block_until_ready(out)

    ref = _reference_forward(x, params)
    assert out.shape == (N, Cout, H, W)
    assert jnp.allclose(out, ref, atol=1e-4, rtol=1e-4), "mismatch vs reference"

    print("KERNEL_OK")
</pallas_src>

<mosaic_0001>
module attributes {stable_mosaic.version = 11 : i64} {
  func.func @_reghead_kernel(%arg0: i32, %arg1: memref<1x8x256xf32, #tpu.memory_space<vmem>>, %arg2: memref<8x72xf32, #tpu.memory_space<vmem>>, %arg3: memref<8x1xf32, #tpu.memory_space<vmem>>, %arg4: memref<8x8xf32, #tpu.memory_space<vmem>>, %arg5: memref<8x1xf32, #tpu.memory_space<vmem>>, %arg6: memref<1x4x256xf32, #tpu.memory_space<vmem>>, %arg7: memref<8x320xf32, #tpu.memory_space<vmem>>, %arg8: memref<72x256xf32, #tpu.memory_space<vmem>>) attributes {dimension_semantics = [#tpu.dimension_semantics<parallel>], iteration_bounds = array<i64: 2>, scalar_prefetch = 0 : i64, scratch_operands = 2 : i64, tpu.core_type = #tpu.core_type<tc>, window_params = [{transform_indices = @transform_0, window_bounds = array<i64: 1, 8, 256>}, {pipeline_mode = #tpu.pipeline_mode<synchronous>, transform_indices = @transform_1, window_bounds = array<i64: 8, 72>}, {pipeline_mode = #tpu.pipeline_mode<synchronous>, transform_indices = @transform_2, window_bounds = array<i64: 8, 1>}, {pipeline_mode = #tpu.pipeline_mode<synchronous>, transform_indices = @transform_3, window_bounds = array<i64: 8, 8>}, {pipeline_mode = #tpu.pipeline_mode<synchronous>, transform_indices = @transform_4, window_bounds = array<i64: 8, 1>}, {transform_indices = @transform_5, window_bounds = array<i64: 1, 4, 256>}]} {
    %cst = arith.constant 0.000000e+00 : f32
    %0 = vector.broadcast %cst : f32 to vector<8x32xf32>
    %c0 = arith.constant 0 : index
    %c0_0 = arith.constant 0 : index
    %1 = vector.load %arg7[%c0, %c0_0] : memref<8x320xf32, #tpu.memory_space<vmem>>, vector<8x32xf32>
    tpu.vector_store %arg7[%c0, %c0_0], %0 {strides = array<i32>} : memref<8x320xf32, #tpu.memory_space<vmem>>, vector<8x32xf32>,
    %cst_1 = arith.constant 0.000000e+00 : f32
    %2 = vector.broadcast %cst_1 : f32 to vector<8x32xf32>
    %c0_2 = arith.constant 0 : index
    %c288 = arith.constant 288 : index
    %3 = vector.load %arg7[%c0_2, %c288] : memref<8x320xf32, #tpu.memory_space<vmem>>, vector<8x32xf32>
    tpu.vector_store %arg7[%c0_2, %c288], %2 {strides = array<i32>} : memref<8x320xf32, #tpu.memory_space<vmem>>, vector<8x32xf32>,
    %c0_3 = arith.constant 0 : index
    %c0_4 = arith.constant 0 : index
    %c0_5 = arith.constant 0 : index
    %4 = vector.load %arg1[%c0_3, %c0_4, %c0_5] : memref<1x8x256xf32, #tpu.memory_space<vmem>>, vector<1x8x256xf32>
    %5 = vector.shape_cast %4 : vector<1x8x256xf32> to vector<8x256xf32>
    %c0_6 = arith.constant 0 : index
    %c32 = arith.constant 32 : index
    %6 = vector.load %arg7[%c0_6, %c32] : memref<8x320xf32, #tpu.memory_space<vmem>>, vector<8x256xf32>
    tpu.vector_store %arg7[%c0_6, %c32], %5 {strides = array<i32>} : memref<8x320xf32, #tpu.memory_space<vmem>>, vector<8x256xf32>,
    %7 = tpu.iota {dimensions = array<i32: 1>} : vector<8x256xi32>
    %c16_i32 = arith.constant 16 : i32
    %c0_i32 = arith.constant 0 : i32
    %8 = arith.cmpi eq, %c16_i32, %c0_i32 : i32
    %c1_i32 = arith.constant 1 : i32
    %9 = arith.select %8, %c1_i32, %c16_i32 : i32
    %10 = vector.broadcast %9 : i32 to vector<8x256xi32>
    %11 = arith.remsi %7, %10 : vector<8x256xi32>
    %c0_i32_7 = arith.constant 0 : i32
    %12 = vector.broadcast %c0_i32_7 : i32 to vector<8x256xi32>
    %13 = arith.cmpi ne, %11, %12 : vector<8x256xi32>
    %c0_i32_8 = arith.constant 0 : i32
    %14 = vector.broadcast %c0_i32_8 : i32 to vector<8x256xi32>
    %15 = arith.cmpi slt, %11, %14 : vector<8x256xi32>
    %c0_i32_9 = arith.constant 0 : i32
    %16 = arith.cmpi slt, %9, %c0_i32_9 : i32
    %17 = vector.broadcast %16 : i1 to vector<8x256xi1>
    %18 = vector.broadcast %17 : vector<8x256xi1> to vector<8x256xi1>
    %19 = arith.xori %15, %18 : vector<8x256xi1>
    %20 = arith.andi %19, %13 : vector<8x256xi1>
    %21 = vector.broadcast %9 : i32 to vector<8x256xi32>
    %22 = arith.addi %11, %21 : vector<8x256xi32>
    %23 = arith.select %20, %22, %11 : vector<8x256xi1>, vector<8x256xi32>
    %c0_i32_10 = arith.constant 0 : i32
    %24 = vector.broadcast %c0_i32_10 : i32 to vector<8x256xi32>
    %25 = arith.cmpi ne, %23, %24 : vector<8x256xi32>
    %c15_i32 = arith.constant 15 : i32
    %26 = vector.broadcast %c15_i32 : i32 to vector<8x256xi32>
    %27 = arith.cmpi ne, %23, %26 : vector<8x256xi32>
    %c0_11 = arith.constant 0 : index
    %c15 = arith.constant 15 : index
    %28 = vector.load %arg7[%c0_11, %c15] : memref<8x320xf32, #tpu.memory_space<vmem>>, vector<8x256xf32>
    %cst_12 = arith.constant 0.000000e+00 : f32
    %29 = vector.broadcast %cst_12 : f32 to vector<8x256xf32>
    %30 = arith.select %25, %28, %29 : vector<8x256xi1>, vector<8x256xf32>
    %c0_13 = arith.constant 0 : index
    %c0_14 = arith.constant 0 : index
    %31 = vector.load %arg8[%c0_13, %c0_14] : memref<72x256xf32, #tpu.memory_space<vmem>>, vector<8x256xf32>
    tpu.vector_store %arg8[%c0_13, %c0_14], %30 {strides = array<i32>} : memref<72x256xf32, #tpu.memory_space<vmem>>, vector<8x256xf32>,
    %c0_15 = arith.constant 0 : index
    %c16 = arith.constant 16 : index
    %32 = vector.load %arg7[%c0_15, %c16] : memref<8x320xf32, #tpu.memory_space<vmem>>, vector<8x256xf32>
    %c8 = arith.constant 8 : index
    %c0_16 = arith.constant 0 : index
    %33 = vector.load %arg8[%c8, %c0_16] : memref<72x256xf32, #tpu.memory_space<vmem>>, vector<8x256xf32>
    tpu.vector_store %arg8[%c8, %c0_16], %32 {strides = array<i32>} : memref<72x256xf32, #tpu.memory_space<vmem>>, vector<8x256xf32>,
    %c0_17 = arith.constant 0 : index
    %c17 = arith.constant 17 : index
    %34 = vector.load %arg7[%c0_17, %c17] : memref<8x320xf32, #tpu.memory_space<vmem>>, vector<8x256xf32>
    %cst_18 = arith.constant 0.000000e+00 : f32
    %35 = vector.broadcast %cst_18 : f32 to vector<8x256xf32>
    %36 = arith.select %27, %34, %35 : vector<8x256xi1>, vector<8x256xf32>
    %c16_19 = arith.constant 16 : index
    %c0_20 = arith.constant 0 : index
    %37 = vector.load %arg8[%c16_19, %c0_20] : memref<72x256xf32, #tpu.memory_space<vmem>>, vector<8x256xf32>
    tpu.vector_store %arg8[%c16_19, %c0_20], %36 {strides = array<i32>} : memref<72x256xf32, #tpu.memory_space<vmem>>, vector<8x256xf32>,
    %c0_21 = arith.constant 0 : index
    %c31 = arith.constant 31 : index
    %38 = vector.load %arg7[%c0_21, %c31] : memref<8x320xf32, #tpu.memory_space<vmem>>, vector<8x256xf32>
    %cst_22 = arith.constant 0.000000e+00 : f32
    %39 = vector.broadcast %cst_22 : f32 to vector<8x256xf32>
    %40 = arith.select %25, %38, %39 : vector<8x256xi1>, vector<8x256xf32>
    %c24 = arith.constant 24 : index
    %c0_23 = arith.constant 0 : index
    %41 = vector.load %arg8[%c24, %c0_23] : memref<72x256xf32, #tpu.memory_space<vmem>>, vector<8x256xf32>
    tpu.vector_store %arg8[%c24, %c0_23], %40 {strides = array<i32>} : memref<72x256xf32, #tpu.memory_space<vmem>>, vector<8x256xf32>,
    %c0_24 = arith.constant 0 : index
    %c32_25 = arith.constant 32 : index
    %42 = vector.load %arg7[%c0_24, %c32_25] : memref<8x320xf32, #tpu.memory_space<vmem>>, vector<8x256xf32>
    %c32_26 = arith.constant 32 : index
    %c0_27 = arith.constant 0 : index
    %43 = vector.load %arg8[%c32_26, %c0_27] : memref<72x256xf32, #tpu.memory_space<vmem>>, vector<8x256xf32>
    tpu.vector_store %arg8[%c32_26, %c0_27], %42 {strides = array<i32>} : memref<72x256xf32, #tpu.memory_space<vmem>>, vector<8x256xf32>,
    %c0_28 = arith.constant 0 : index
    %c33 = arith.constant 33 : index
    %44 = vector.load %arg7[%c0_28, %c33] : memref<8x320xf32, #tpu.memory_space<vmem>>, vector<8x256xf32>
    %cst_29 = arith.constant 0.000000e+00 : f32
    %45 = vector.broadcast %cst_29 : f32 to vector<8x256xf32>
    %46 = arith.select %27, %44, %45 : vector<8x256xi1>, vector<8x256xf32>
    %c40 = arith.constant 40 : index
    %c0_30 = arith.constant 0 : index
    %47 = vector.load %arg8[%c40, %c0_30] : memref<72x256xf32, #tpu.memory_space<vmem>>, vector<8x256xf32>
    tpu.vector_store %arg8[%c40, %c0_30], %46 {strides = array<i32>} : memref<72x256xf32, #tpu.memory_space<vmem>>, vector<8x256xf32>,
    %c0_31 = arith.constant 0 : index
    %c47 = arith.constant 47 : index
    %48 = vector.load %arg7[%c0_31, %c47] : memref<8x320xf32, #tpu.memory_space<vmem>>, vector<8x256xf32>
    %cst_32 = arith.constant 0.000000e+00 : f32
    %49 = vector.broadcast %cst_32 : f32 to vector<8x256xf32>
    %50 = arith.select %25, %48, %49 : vector<8x256xi1>, vector<8x256xf32>
    %c48 = arith.constant 48 : index
    %c0_33 = arith.constant 0 : index
    %51 = vector.load %arg8[%c48, %c0_33] : memref<72x256xf32, #tpu.memory_space<vmem>>, vector<8x256xf32>
    tpu.vector_store %arg8[%c48, %c0_33], %50 {strides = array<i32>} : memref<72x256xf32, #tpu.memory_space<vmem>>, vector<8x256xf32>,
    %c0_34 = arith.constant 0 : index
    %c48_35 = arith.constant 48 : index
    %52 = vector.load %arg7[%c0_34, %c48_35] : memref<8x320xf32, #tpu.memory_space<vmem>>, vector<8x256xf32>
    %c56 = arith.constant 56 : index
    %c0_36 = arith.constant 0 : index
    %53 = vector.load %arg8[%c56, %c0_36] : memref<72x256xf32, #tpu.memory_space<vmem>>, vector<8x256xf32>
    tpu.vector_store %arg8[%c56, %c0_36], %52 {strides = array<i32>} : memref<72x256xf32, #tpu.memory_space<vmem>>, vector<8x256xf32>,
    %c0_37 = arith.constant 0 : index
    %c49 = arith.constant 49 : index
    %54 = vector.load %arg7[%c0_37, %c49] : memref<8x320xf32, #tpu.memory_space<vmem>>, vector<8x256xf32>
    %cst_38 = arith.constant 0.000000e+00 : f32
    %55 = vector.broadcast %cst_38 : f32 to vector<8x256xf32>
    %56 = arith.select %27, %54, %55 : vector<8x256xi1>, vector<8x256xf32>
    %c64 = arith.constant 64 : index
    %c0_39 = arith.constant 0 : index
    %57 = vector.load %arg8[%c64, %c0_39] : memref<72x256xf32, #tpu.memory_space<vmem>>, vector<8x256xf32>
    tpu.vector_store %arg8[%c64, %c0_39], %56 {strides = array<i32>} : memref<72x256xf32, #tpu.memory_space<vmem>>, vector<8x256xf32>,
    %c0_40 = arith.constant 0 : index
    %c0_41 = arith.constant 0 : index
    %58 = vector.load %arg2[%c0_40, %c0_41] : memref<8x72xf32, #tpu.memory_space<vmem>>, vector<8x72xf32>
    %c0_42 = arith.constant 0 : index
    %c0_43 = arith.constant 0 : index
    %59 = vector.load %arg8[%c0_42, %c0_43] : memref<72x256xf32, #tpu.memory_space<vmem>>, vector<72x256xf32>
    %cst_44 = arith.constant dense<0.000000e+00> : vector<8x256xf32>
    %60 = tpu.matmul %58, %59, %cst_44 {dimension_numbers = #tpu.dot_dimension_numbers<[1], [0], [0], [1], [0, 0, 1, 1], [], []>} : vector<8x72xf32>, vector<72x256xf32>, vector<8x256xf32> -> vector<8x256xf32>
    %c0_45 = arith.constant 0 : index
    %c0_46 = arith.constant 0 : index
    %61 = vector.load %arg3[%c0_45, %c0_46] : memref<8x1xf32, #tpu.memory_space<vmem>>, vector<8x1xf32>
    %62 = vector.broadcast %61 : vector<8x1xf32> to vector<8x256xf32>
    %63 = arith.addf %60, %62 : vector<8x256xf32>
    %cst_47 = arith.constant 0.000000e+00 : f32
    %64 = vector.broadcast %cst_47 : f32 to vector<8x256xf32>
    %65 = arith.maximumf %63, %64 : vector<8x256xf32>
    %c0_48 = arith.constant 0 : index
    %c0_49 = arith.constant 0 : index
    %66 = vector.load %arg4[%c0_48, %c0_49] : memref<8x8xf32, #tpu.memory_space<vmem>>, vector<8x8xf32>
    %cst_50 = arith.constant dense<0.000000e+00> : vector<8x256xf32>
    %67 = tpu.matmul %66, %65, %cst_50 {dimension_numbers = #tpu.dot_dimension_numbers<[1], [0], [0], [1], [0, 0, 1, 1], [], []>} : vector<8x8xf32>, vector<8x256xf32>, vector<8x256xf32> -> vector<8x256xf32>
    %c0_51 = arith.constant 0 : index
    %c0_52 = arith.constant 0 : index
    %68 = vector.load %arg5[%c0_51, %c0_52] : memref<8x1xf32, #tpu.memory_space<vmem>>, vector<8x1xf32>
    %69 = vector.broadcast %68 : vector<8x1xf32> to vector<8x256xf32>
    %70 = arith.addf %67, %69 : vector<8x256xf32>
    %71 = arith.negf %70 : vector<8x256xf32>
    %72 = math.exp %71 : vector<8x256xf32>
    %cst_53 = arith.constant 1.000000e+00 : f32
    %73 = vector.broadcast %cst_53 : f32 to vector<8x256xf32>
    %74 = arith.addf %73, %72 : vector<8x256xf32>
    %75 = arith.divf %73, %74 : vector<8x256xf32>
    %76 = vector.extract_strided_slice %75 {offsets = [0, 0], sizes = [4, 256], strides = [1, 1]} : vector<8x256xf32> to vector<4x256xf32>
    %c0_54 = arith.constant 0 : index
    %c0_55 = arith.constant 0 : index
    %c0_56 = arith.constant 0 : index
    %77 = vector.load %arg6[%c0_54, %c0_55, %c0_56] : memref<1x4x256xf32, #tpu.memory_space<vmem>>, vector<1x4x256xf32>
    %78 = vector.shape_cast %77 : vector<1x4x256xf32> to vector<4x256xf32>
    %79 = vector.shape_cast %76 : vector<4x256xf32> to vector<1x4x256xf32>
    tpu.vector_store %arg6[%c0_54, %c0_55, %c0_56], %79 {strides = array<i32>} : memref<1x4x256xf32, #tpu.memory_space<vmem>>, vector<1x4x256xf32>,
    return
  }
  func.func @transform_0(%arg0: i32) -> (i32, i32, i32) {
    %c0_i32 = arith.constant 0 : i32
    %c0_i32_0 = arith.constant 0 : i32
    %c0_i32_1 = arith.constant 0 : i32
    return %arg0, %c0_i32, %c0_i32_0 : i32, i32, i32
  }
  func.func @transform_1(%arg0: i32) -> (i32, i32) {
    %c0_i32 = arith.constant 0 : i32
    %c0_i32_0 = arith.constant 0 : i32
    %c0_i32_1 = arith.constant 0 : i32
    return %c0_i32, %c0_i32_0 : i32, i32
  }
  func.func @transform_2(%arg0: i32) -> (i32, i32) {
    %c0_i32 = arith.constant 0 : i32
    %c0_i32_0 = arith.constant 0 : i32
    %c0_i32_1 = arith.constant 0 : i32
    return %c0_i32, %c0_i32_0 : i32, i32
  }
  func.func @transform_3(%arg0: i32) -> (i32, i32) {
    %c0_i32 = arith.constant 0 : i32
    %c0_i32_0 = arith.constant 0 : i32
    %c0_i32_1 = arith.constant 0 : i32
    return %c0_i32, %c0_i32_0 : i32, i32
  }
  func.func @transform_4(%arg0: i32) -> (i32, i32) {
    %c0_i32 = arith.constant 0 : i32
    %c0_i32_0 = arith.constant 0 : i32
    %c0_i32_1 = arith.constant 0 : i32
    return %c0_i32, %c0_i32_0 : i32, i32
  }
  func.func @transform_5(%arg0: i32) -> (i32, i32, i32) {
    %c0_i32 = arith.constant 0 : i32
    %c0_i32_0 = arith.constant 0 : i32
    %c0_i32_1 = arith.constant 0 : i32
    return %arg0, %c0_i32, %c0_i32_0 : i32, i32, i32
  }
}

</mosaic_0001>

<bundles_post_ra>
// kernel: reghead_forward.1
= control target key start
LH: loop header
LB: loop body
LE: loop exit
PB: predicated region body
PF: predicated region fallthrough
CT: control target
= control target key end

     0   :  { %s890_s18 = smov 0   ;;  %s991_s0 = inlined_call_operand.vmem [shape: f32[2,8,256], index: 0, kind: input, shape index: {}]   ;;  %s992_s1 = inlined_call_operand.vmem [shape: f32[8,72], index: 1, kind: input, shape index: {}]   ;;  %s993_s2 = inlined_call_operand.vmem [shape: f32[8,1], index: 2, kind: input, shape index: {}]   ;;  %s994_s3 = inlined_call_operand.vmem [shape: f32[8,8], index: 3, kind: input, shape index: {}]   ;;  %s995_s4 = inlined_call_operand.vmem [shape: f32[8,1], index: 4, kind: input, shape index: {}]   ;;  %s996_s5 = inlined_call_operand.vmem [shape: f32[2,4,256], index: 5, kind: output, shape index: {}]  }
   0x1 LB: > { %s715_s19 = sadd.s32 4294967295, %s845_s18   ;;  %p719_p0 = scmp.ge.s32.totalorder %s845_s18, 1  ;;  %s845_s18 = sphi %s890_s18, %s15_s18  }
   0x2   : > { %p187_p1 = scmp.lt.s32.totalorder %s845_s18, 3 }
   0x4   : > { %p188_p2 = pnand %p719_p0, %p187_p1 }
   0x5   : > { %p215_p3 = scmp.lt.s32.totalorder (!%p188_p2), %s715_s19, 1  ;;  %vm225_vm0 = vcmask (!%p188_p2), 261120   ;;  %vm227_vm1 = vcmask (!%p188_p2), 523520   ;;  %v847_v0 = vmov (!%p188_p2), 0.0   ;;  %s848_s24 = smov (!%p188_p2), 32   ;;  %vm241_vm2 = vcmask (!%p188_p2), 1047808  }
   0x6   : > { %191 = sbr.rel (%p188_p2) target bundleno = 758 (0x2f6), region = 40  ;;  %226 = vst.msk [vmem:[#allocation2] sm:$0xff] (!%p188_p2), %vm225_vm0, %v847_v0  ;;  %552 = vmatprep.mubr.f32.mxu0 (!%p188_p2), %v847_v0  ;;  %636 = vmatprep.mubr.f32.mxu1 (!%p188_p2), %v847_v0  ;;  %s849_s25 = smov (!%p188_p2), 112   ;;  %v858_v9 = vmov (!%p188_p2), 0   ;;  %v478_v10 = vld [vmem:[%s993_s2] sm:$0xff] (!%p188_p2)  ;;  %v245_v13 = vlaneseq (!%p188_p2)  ;;  %vm288_vm3 = vcmask (!%p188_p2), 924672  }
   0x7   : > { %228 = vst.msk [vmem:[#allocation2 + $0x10] sm:$0xff] (!%p188_p2), %vm227_vm1, %v847_v0  ;;  %s850_s26 = smov (!%p188_p2), 113   ;;  %s851_s27 = smov (!%p188_p2), 97   ;;  %829 = vset.pattern.permute.xlu1 (!%p188_p2), %v858_v9  ;;  %830 = vset.pattern.permute.xlu0 (!%p188_p2), %v858_v9  ;;  %vm309_vm5 = vcmask (!%p188_p2), 916480   ;;  %vm328_vm7 = vcmask (!%p188_p2), 908288   ;;  %vm859_vm8 = vmmov (!%p188_p2), 1  }
   0x8   : > { %s852_s28 = smov (!%p188_p2), 111   ;;  %s853_s29 = smov (!%p188_p2), 95   ;;  %v246_v16 = vand.u32 (!%p188_p2), 127, %v245_v13  ;;  %vm349_vm10 = vcmask (!%p188_p2), 793600   ;;  %vm370_vm14 = vcmask (!%p188_p2), 785408   ;;  %v561_v28 = vld [vmem:[%s994_s3] sm:$0xff] (!%p188_p2) }
   0x9   : > { %s854_s30 = smov (!%p188_p2), 96   ;;  %s855_s6 = smov (!%p188_p2), 81  }
   0xa   : > { %s856_s7 = smov (!%p188_p2), 79   ;;  %s857_s8 = smov (!%p188_p2), 80   ;;  %v247_v19 = vadd.s32 (!%p188_p2), 128, %v246_v16  ;;  %v252_v23 = vand.u32 (!%p188_p2), 15, %v246_v16 }
   0xc   : > { %v259_v22 = vand.u32 (!%p188_p2), 15, %v247_v19  ;;  %vm916_vm6 = vcmp.ne.s32.totalorder (!%p188_p2), %v252_v23, 0  ;;  %vm938_vm13 = vcmp.ne.s32.totalorder (!%p188_p2), %v252_v23, 15 }
   0xd   : > { %s1010_s19 = smov (!%p215_p3, %s715_s19), 1  ;;  %vm934_vm12 = vmpackc.low %vm859_vm8, %vm916_vm6 }
   0xe   : > { %s730_s20 = sshll.u32 %s1010_s19, 4  ;;  %vm912_vm4 = vcmp.ne.s32.totalorder %v259_v22, 0  ;;  %vm927_vm11 = vcmp.ne.s32.totalorder %v259_v22, 15  ;;  %vm754_vm1 = vmpackc.low %vm916_vm6, %vm938_vm13  ;;  %vm450_vm6 = vcmask 646144   ;;  %s731_s17 = sshll.u32 %s1010_s19, 3 }
   0xf   : > { %s219_s23 = scalar_lea.vmem %s991_s0, %s730_s20  ;;  %vm923_vm9 = vmpackc.low %vm859_vm8, %vm912_vm4  ;;  %s224_s22 = scalar_lea.vmem %s996_s5, %s731_s17 }
  0x10   : > { %v229_v1 = vld [vmem:[%s219_s23] sm:$0xff]  ;;  %v230_v2 = vld [vmem:[%s219_s23 + $0x8] sm:$0xff]  ;;  %vm751_vm15 = vmpackc.low %vm912_vm4, %vm927_vm11  ;;  %vm410_vm4 = vcmask 662528  }
  0x11   : > { %233 = vrot.lane.b32.xlu0 %v229_v1, %s848_s24 }
  0x15   : > { %235 = vrot.lane.b32.xlu0 %v230_v2, %s848_s24 }
  0x83   : > { %v234_v3 = vpop.permute.xlu0 %233 }
  0x84   : > { %242 = vst.msk [vmem:[#allocation2] sm:$0xff] %vm241_vm2, %v234_v3  ;;  %vm757_vm2 = vmpackc.low %vm927_vm11, %vm859_vm8 }
  0x87   : > { %v236_v4 = vpop.permute.xlu0 %235 }
  0x88   : > { %v237_v5 = vsel %vm225_vm0, %v234_v3, %v236_v4  ;;  %244 = vst.msk [vmem:[#allocation2 + $0x10] sm:$0xff] %vm225_vm0, %v236_v4  ;;  %vm389_vm0 = vcmask 777216  }
  0x8b   : > { %v297_v6 = vld [vmem:[#allocation2] sm:$0xff] }
  0x8c   : > { %303 = vrot.lane.b32.xlu1 %v297_v6, %s849_s25  ;;  %282 = vrot.lane.b32.xlu0 %v297_v6, %s850_s26 }
  0x8f   : > { %v278_v7 = vld [vmem:[#allocation2 + $0x10] sm:$0xff] }
  0x90   : > { %343 = vrot.lane.b32.xlu1 %v297_v6, %s851_s27  ;;  %322 = vrot.lane.b32.xlu0 %v297_v6, %s852_s28  ;;  %v789_v8 = vpack.i.bf16 %v278_v7, %v237_v5 }
  0x94   : > { %383 = vrot.lane.b32.xlu1 %v297_v6, %s853_s29  ;;  %364 = vrot.lane.b32.xlu0 %v297_v6, %s854_s30 }
  0x98   : > { %404 = vrot.lane.b32.xlu0 %v297_v6, %s855_s6  ;;  %790 = vrot.lane.b32.xlu1 %v789_v8, %s850_s26 }
  0x9c   : > { %800 = vrot.lane.b32.xlu0 %v789_v8, %s852_s28  ;;  %795 = vrot.lane.b32.xlu1 %v789_v8, %s849_s25 }
  0xa0   : > { %810 = vrot.lane.b32.xlu0 %v789_v8, %s854_s30  ;;  %805 = vrot.lane.b32.xlu1 %v789_v8, %s851_s27 }
  0xa4   : > { %820 = vrot.lane.b32.xlu0 %v789_v8, %s855_s6  ;;  %815 = vrot.lane.b32.xlu1 %v789_v8, %s853_s29 }
  0xa8   : > { %446 = vrot.lane.b32.xlu0 %v237_v5, %s856_s7  ;;  %825 = vrot.lane.b32.xlu1 %v789_v8, %s857_s8 }
  0xac   : > { %444 = vrot.lane.b32.xlu0 %v297_v6, %s856_s7  ;;  %425 = vrot.lane.b32.xlu1 %v297_v6, %s857_s8 }
  0xb0   : > { %448 = vrot.lane.b32.xlu1 %v278_v7, %s856_s7 }
  0xb4   : > { %481 = vperm.xlu1 %829, %v478_v10  }
  0xfe   : > { %v304_v11 = vpop.permute.xlu1 %303  ;;  %v283_v12 = vpop.permute.xlu0 %282 }
 0x102   : > { %v344_v14 = vpop.permute.xlu1 %343  ;;  %v323_v15 = vpop.permute.xlu0 %322 }
 0x106   : > { %v384_v17 = vpop.permute.xlu1 %383  ;;  %v365_v18 = vpop.permute.xlu0 %364 }
 0x10a   : > { %v791_v20 = vpop.permute.xlu1 %790  ;;  %v910_v21 = vpop.permute.xlu0 %404 }
 0x10b   : > { %v793_v24 = vunpack.i.h.bf16 %v791_v20  ;;  %v792_v25 = vunpack.i.l.bf16 %v791_v20  ;;  %v562_v20 = vld [vmem:[%s995_s4] sm:$0xff] }
 0x10c   : > { %565 = vperm.xlu0 %830, %v562_v20  }
 0x10d   : > { %v290_v32 = vsel %vm288_vm3, %v792_v25, %v793_v24  ;;  %v289_v33 = vsel %vm288_vm3, %v283_v12, %v792_v25  ;;  %vm760_vm3 = vmpackc.low %vm938_vm13, %vm859_vm8  ;;  %vm568_vm8 = vcmask 64512  }
 0x10e   : > { %v796_v26 = vpop.permute.xlu1 %795  ;;  %v801_v27 = vpop.permute.xlu0 %800 }
 0x10f   : > { %v798_v29 = vunpack.i.h.bf16 %v796_v26  ;;  %v797_v30 = vunpack.i.l.bf16 %v796_v26  ;;  %v803_v34 = vunpack.i.h.bf16 %v801_v27  ;;  %v802_v35 = vunpack.i.l.bf16 %v801_v27 }
 0x111   : > { %v311_v36 = vsel %vm309_vm5, %v797_v30, %v798_v29  ;;  %v310_v38 = vsel %vm309_vm5, %v304_v11, %v797_v30  ;;  %v329_v50 = vsel %vm328_vm7, %v323_v15, %v802_v35  ;;  %v330_v51 = vsel %vm328_vm7, %v802_v35, %v803_v34 }
 0x112   : > { %v806_v39 = vpop.permute.xlu1 %805  ;;  %v811_v40 = vpop.permute.xlu0 %810  ;;  %v744_v42 = vpack.c.bf16 %v311_v36, %v290_v32  ;;  %v747_v43 = vpack.c.bf16 %v310_v38, %v289_v33  ;;  %vm431_vm5 = vcmask 654336   ;;  %vm484_vm7 = vcmask 588800  }
 0x113   : > { %v808_v45 = vunpack.i.h.bf16 %v806_v39  ;;  %v807_v46 = vunpack.i.l.bf16 %v806_v39  ;;  %v813_v48 = vunpack.i.h.bf16 %v811_v40  ;;  %v812_v49 = vunpack.i.l.bf16 %v811_v40 }
 0x114   : > { %746 = vmatprep.subr.msk.bf16.mxu0 %vm923_vm9, %v744_v42 }
 0x115   : > { %v350_v52 = vsel %vm349_vm10, %v344_v14, %v807_v46  ;;  %v351_v53 = vsel %vm349_vm10, %v807_v46, %v808_v45  ;;  %749 = vmatpush1.bf16.msk.msra.mxu0 %vm934_vm12, %v747_v43  ;;  %v371_v60 = vsel %vm370_vm14, %v365_v18, %v812_v49  ;;  %v372_v61 = vsel %vm370_vm14, %v812_v49, %v813_v48  ;;  %v459_v18 = vld [vmem:[%s992_s1] sm:$0xff] }
 0x116   : > { %v750_v54 = vpack.c.bf16 %v351_v53, %v330_v51  ;;  %v753_v55 = vpack.c.bf16 %v350_v52, %v329_v50  ;;  %v816_v56 = vpop.permute.xlu1 %815  ;;  %v821_v57 = vpop.permute.xlu0 %820 }
 0x117   : > { %v818_v58 = vunpack.i.h.bf16 %v816_v56  ;;  %v817_v59 = vunpack.i.l.bf16 %v816_v56  ;;  %v823_v0 = vunpack.i.h.bf16 %v821_v57  ;;  %v822_v1 = vunpack.i.l.bf16 %v821_v57 }
 0x118   : > { %752 = vmatprep.subr.msk.bf16.mxu0 %vm751_vm15, %v750_v54 }
 0x119   : > { %v390_v62 = vsel %vm389_vm0, %v384_v17, %v817_v59  ;;  %v391_v63 = vsel %vm389_vm0, %v817_v59, %v818_v58  ;;  %755 = vmatpush1.bf16.msk.msra.mxu0 %vm754_vm1, %v753_v55  ;;  %v412_v8 = vsel %vm410_vm4, %v822_v1, %v823_v0  ;;  %v411_v12 = vsel %vm410_vm4, %v910_v21, %v822_v1 }
 0x11a   : > { %v756_v2 = vpack.c.bf16 %v391_v63, %v372_v61  ;;  %v759_v3 = vpack.c.bf16 %v390_v62, %v371_v60  ;;  %v826_v4 = vpop.permute.xlu1 %825  ;;  %v447_v7 = vpop.permute.xlu0 %446 }
 0x11b   : > { %v828_v5 = vunpack.i.h.bf16 %v826_v4  ;;  %v827_v6 = vunpack.i.l.bf16 %v826_v4 }
 0x11c   : > { %758 = vmatprep.subr.msk.bf16.mxu0 %vm757_vm2, %v756_v2 }
 0x11d   : > { %761 = vmatpush1.bf16.msk.msra.mxu0 %vm760_vm3, %v759_v3  ;;  %v433_v9 = vsel %vm431_vm5, %v827_v6, %v828_v5 }
 0x11e   : > { %v426_v10 = vpop.permute.xlu1 %425  ;;  %v762_v11 = vpack.c.bf16 %v433_v9, %v412_v8  ;;  %v445_v15 = vpop.permute.xlu0 %444 }
 0x11f   : > { %v432_v13 = vsel %vm431_vm5, %v426_v10, %v827_v6  ;;  %v451_v19 = vsel %vm450_vm6, %v445_v15, %v447_v7 }
 0x120   : > { %v765_v14 = vpack.c.bf16 %v432_v13, %v411_v12  ;;  %764 = vmatprep.subr.msk.bf16.mxu0 %vm923_vm9, %v762_v11 }
 0x122   : > { %v449_v16 = vpop.permute.xlu1 %448  ;;  %767 = vmatpush1.bf16.msk.msra.mxu0 %vm934_vm12, %v765_v14 }
 0x123   : > { %v452_v17 = vsel %vm450_vm6, %v447_v7, %v449_v16 }
 0x124   : > { %742 = vmatprep.subr.msk.mxu0 %vm927_vm11, %v452_v17 }
 0x126   : > { %743 = vmatpush1.msk.msra.mxu0 %vm938_vm13, %v451_v19 }
 0x127   : > { %724 = vmatmul.mubr.msk.f32.vlgmr.msra.gmra.mrb[0].mxu0 %vm484_vm7, %v459_v18 }
 0x133   : > { %v482_v21 = vpop.permute.xlu1 %481 }
 0x18b   : > { %v566_v29 = vpop.permute.xlu0 %565 }
 0x1fa   : > { %v554_v22 = vpop.f32.mrb[0].mxu0 }
 0x1fb   : > { %v555_v23 = vadd.f32 %v554_v22, %v482_v21  ;;  %v556_v24 = vpop.f32.mrb[1].mxu0 }
 0x1fc   : > { %v557_v25 = vadd.f32 %v556_v24, %v482_v21 }
 0x1fd   : > { %v559_v27 = vmax.f32 %v555_v23, 0.0 }
 0x1fe   : > { %v560_v26 = vmax.f32 %v557_v25, 0.0 }
 0x200   : > { %572 = vmatprep.subr.mxu1 %v560_v26 }
 0x201   : > { %573 = vmatpush1.msra.mxu1 %v559_v27 }
 0x202   : > { %725 = vmatmul.mubr.msk.f32.vlgmr.msra.gmra.mrb[0].mxu1 %vm568_vm8, %v561_v28 }
 0x2d5   : > { %v638_v30 = vpop.f32.mrb[0].mxu1 }
 0x2d6   : > { %v639_v31 = vadd.f32 %v638_v30, %v566_v29  ;;  %v640_v32 = vpop.f32.mrb[1].mxu1 }
 0x2d7   : > { %v641_v33 = vadd.f32 %v640_v32, %v566_v29 }
 0x2d8   : > { %v726_v34 = vmul.f32 -1.442695, %v639_v31 }
 0x2d9   : > { %v727_v35 = vmul.f32 -1.442695, %v641_v33 }
 0x2da   : > { %831 = vpow2.f32 %v726_v34 }
 0x2db   : > { %833 = vpow2.f32 %v727_v35 }
 0x2e4   : > { %v832_v36 = vpop.eup %831 }
 0x2e5   : > { %v834_v37 = vpop.eup %833  ;;  %v649_v38 = vadd.f32 1.0, %v832_v36 }
 0x2e6   : > { %v650_v39 = vadd.f32 1.0, %v834_v37 }
 0x2e7   : > { %835 = vrcp.f32 %v649_v38 }
 0x2e8   : > { %837 = vrcp.f32 %v650_v39 }
 0x2f1   : > { %v836_v40 = vpop.eup %835 }
 0x2f2   : > { %v838_v41 = vpop.eup %837 }
 0x2f3   : > { %v657_v42 = vcombine.low %v836_v40, %v838_v41 }
 0x2f5   : > { %659 = vst [vmem:[%s224_s22] sm:$0xff] %v657_v42 }
 0x2f6 PF: > { %s15_s18 = sadd.s32 1, %s845_s18  }
 0x2f7   : > { %p12_p4 = scmp.ge.s32.totalorder %s15_s18, 4  }
 0x2f9   :  { %14 = sbr.rel (!%p12_p4) target bundleno = 1 (0x1), region = 70 }

</bundles_post_ra>
